<compile_context>
chip_gen: v7x
topology: tpu7x:2x2x1
jax: 0.10.0
libtpu: 0.0.40
codegen_flags: <defaults>
</compile_context>

<pallas_src>
import jax
import jax.numpy as jnp
from jax.experimental import pallas as pl
from jax.experimental.pallas import tpu as pltpu

INPUT_SIZE = 36
H1 = 128
H2 = 64
OUT = 2
OUT_PAD = 128  # lane-aligned logits width; real logits live in [:, :OUT]


def _round_up(n, m):
    return ((n + m - 1) // m) * m


def mlp_kernel(x_ref, w1_ref, b1_ref, w2_ref, b2_ref, w3_ref, b3_ref, o_ref):
    # fc1 + ReLU  (dropout1 is identity at inference). bf16 MXU inputs, f32 acc.
    h1 = jnp.dot(x_ref[...], w1_ref[...], preferred_element_type=jnp.float32)
    h1 = jnp.maximum(h1 + b1_ref[...], 0.0)
    # fc2 + ReLU  (dropout2 is identity at inference).
    h2 = jnp.dot(h1.astype(jnp.bfloat16), w2_ref[...],
                 preferred_element_type=jnp.float32)
    h2 = jnp.maximum(h2 + b2_ref[...], 0.0)
    # fc3 (logits), lane-padded to OUT_PAD columns for a dense vector store.
    logits = jnp.dot(h2.astype(jnp.bfloat16), w3_ref[...],
                     preferred_element_type=jnp.float32)
    o_ref[...] = (logits + b3_ref[...]).astype(o_ref.dtype)


def exercise_classifier_forward(x, params, *, block_batch=1024):
    """x: [B, INPUT_SIZE]. params: bf16 weights [in, out] (pre-transposed) + f32 biases [1, out]."""
    B = x.shape[0]
    # Batch tile: multiple of 8 sublanes, capped at block_batch (512-2048 sweet spot).
    TB = min(block_batch, _round_up(max(B, 8), 8))
    B_pad = _round_up(B, TB)
    nb = B_pad // TB

    # Stream x in bf16 (halves the dominant HBM read); zero-pad the batch tail.
    x_bf16 = x.astype(jnp.bfloat16)
    if B_pad != B:
        x_bf16 = jnp.pad(x_bf16, ((0, B_pad - B), (0, 0)))
    # NOTE: feature dim (36) is deliberately NOT padded to 128 in HBM (Mosaic
    # pads K inside vregs/MXU for free; padding in HBM would 3.5x the x traffic).

    w1, b1 = params["w1"], params["b1"]
    w2, b2 = params["w2"], params["b2"]
    # Lane-pad fc3 weights/bias from OUT=2 to OUT_PAD=128 with zeros (cheap: 64x2 weights).
    w3 = jnp.pad(params["w3"], ((0, 0), (0, OUT_PAD - OUT)))
    b3 = jnp.pad(params["b3"], ((0, 0), (0, OUT_PAD - OUT)))

    resident = lambda shape: pl.BlockSpec(shape, lambda i: (0,) * len(shape))

    flops = 2 * B_pad * (INPUT_SIZE * H1 + H1 * H2 + H2 * OUT_PAD)
    bytes_accessed = (
        x_bf16.size * 2
        + (w1.size + w2.size + w3.size) * 2
        + (b1.size + b2.size + b3.size) * 4
        + B_pad * OUT_PAD * 4
    )

    out_padded = pl.pallas_call(
        mlp_kernel,
        out_shape=jax.ShapeDtypeStruct((B_pad, OUT_PAD), jnp.float32),
        grid=(nb,),
        in_specs=[
            pl.BlockSpec((TB, INPUT_SIZE), lambda i: (i, 0)),  # streamed batch tile
            resident(w1.shape), resident(b1.shape),            # VMEM-resident params
            resident(w2.shape), resident(b2.shape),
            resident(w3.shape), resident(b3.shape),
        ],
        out_specs=pl.BlockSpec((TB, OUT_PAD), lambda i: (i, 0)),
        compiler_params=pltpu.CompilerParams(
            dimension_semantics=("parallel",),  # megacore sharding on v7x; no-op on v5e/v6e
        ),
        cost_estimate=pl.CostEstimate(
            flops=flops, transcendentals=0, bytes_accessed=bytes_accessed),
    )(x_bf16, w1, b1, w2, b2, w3, b3)

    return out_padded[:B, :OUT]


def init_params(key):
    """Deterministic init mimicking nn.Linear's U(-1/sqrt(fan_in), 1/sqrt(fan_in)).
    Weights stored as [in_features, out_features] (transposed vs. PyTorch), bf16.
    Biases kept in f32 (added after the f32-accumulating matmul)."""
    ks = jax.random.split(key, 6)

    def linear(kw, kb, fan_in, fan_out):
        bound = 1.0 / jnp.sqrt(jnp.float32(fan_in))
        w = jax.random.uniform(kw, (fan_in, fan_out), jnp.float32, -bound, bound)
        b = jax.random.uniform(kb, (1, fan_out), jnp.float32, -bound, bound)
        return w.astype(jnp.bfloat16), b

    w1, b1 = linear(ks[0], ks[1], INPUT_SIZE, H1)
    w2, b2 = linear(ks[2], ks[3], H1, H2)
    w3, b3 = linear(ks[4], ks[5], H2, OUT)
    return {"w1": w1, "b1": b1, "w2": w2, "b2": b2, "w3": w3, "b3": b3}


def reference_forward(x, p):
    """Pure-JAX reference mirroring the kernel's dtype behavior (bf16 matmul inputs,
    f32 accumulation, f32 bias/ReLU epilogue). Dropout = identity at inference."""
    xb = x.astype(jnp.bfloat16)
    h1 = jnp.dot(xb, p["w1"], preferred_element_type=jnp.float32) + p["b1"]
    h1 = jnp.maximum(h1, 0.0)
    h2 = jnp.dot(h1.astype(jnp.bfloat16), p["w2"],
                 preferred_element_type=jnp.float32) + p["b2"]
    h2 = jnp.maximum(h2, 0.0)
    return jnp.dot(h2.astype(jnp.bfloat16), p["w3"],
                   preferred_element_type=jnp.float32) + p["b3"]


if __name__ == "__main__":
    key = jax.random.PRNGKey(0)
    k_x, k_x2, k_p = jax.random.split(key, 3)
    params = init_params(k_p)

    # Small batch that is NOT a multiple of 8 -> exercises the tail-padding guard.
    batch = 12
    x = jax.random.normal(k_x, (batch, INPUT_SIZE), jnp.float32)
    out = jax.block_until_ready(exercise_classifier_forward(x, params))
    ref = reference_forward(x, params)
    assert out.shape == (batch, OUT)
    assert jnp.allclose(out, ref, atol=1e-3, rtol=1e-3)

    # Slightly larger batch with a small tile -> exercises a multi-step pipelined grid.
    batch2 = 200
    x2 = jax.random.normal(k_x2, (batch2, INPUT_SIZE), jnp.float32)
    out2 = jax.block_until_ready(
        exercise_classifier_forward(x2, params, block_batch=64))
    ref2 = reference_forward(x2, params)
    assert out2.shape == (batch2, OUT)
    assert jnp.allclose(out2, ref2, atol=1e-3, rtol=1e-3)

    print("KERNEL_OK")
</pallas_src>

<mosaic_0001>
module attributes {stable_mosaic.version = 11 : i64} {
  func.func @mlp_kernel(%arg0: i32, %arg1: memref<16x36xbf16, #tpu.memory_space<vmem>>, %arg2: memref<36x128xbf16, #tpu.memory_space<vmem>>, %arg3: memref<1x128xf32, #tpu.memory_space<vmem>>, %arg4: memref<128x64xbf16, #tpu.memory_space<vmem>>, %arg5: memref<1x64xf32, #tpu.memory_space<vmem>>, %arg6: memref<64x128xbf16, #tpu.memory_space<vmem>>, %arg7: memref<1x128xf32, #tpu.memory_space<vmem>>, %arg8: memref<16x128xf32, #tpu.memory_space<vmem>>) attributes {dimension_semantics = [#tpu.dimension_semantics<parallel>], iteration_bounds = array<i64: 1>, scalar_prefetch = 0 : i64, scratch_operands = 0 : i64, tpu.core_type = #tpu.core_type<tc>, window_params = [{transform_indices = @transform_0, window_bounds = array<i64: 16, 36>}, {pipeline_mode = #tpu.pipeline_mode<synchronous>, transform_indices = @transform_1, window_bounds = array<i64: 36, 128>}, {pipeline_mode = #tpu.pipeline_mode<synchronous>, transform_indices = @transform_2, window_bounds = array<i64: 1, 128>}, {pipeline_mode = #tpu.pipeline_mode<synchronous>, transform_indices = @transform_3, window_bounds = array<i64: 128, 64>}, {pipeline_mode = #tpu.pipeline_mode<synchronous>, transform_indices = @transform_4, window_bounds = array<i64: 1, 64>}, {pipeline_mode = #tpu.pipeline_mode<synchronous>, transform_indices = @transform_5, window_bounds = array<i64: 64, 128>}, {pipeline_mode = #tpu.pipeline_mode<synchronous>, transform_indices = @transform_6, window_bounds = array<i64: 1, 128>}, {transform_indices = @transform_7, window_bounds = array<i64: 16, 128>}]} {
    %c0 = arith.constant 0 : index
    %c0_0 = arith.constant 0 : index
    %0 = vector.load %arg1[%c0, %c0_0] : memref<16x36xbf16, #tpu.memory_space<vmem>>, vector<16x36xbf16>
    %c0_1 = arith.constant 0 : index
    %c0_2 = arith.constant 0 : index
    %1 = vector.load %arg2[%c0_1, %c0_2] : memref<36x128xbf16, #tpu.memory_space<vmem>>, vector<36x128xbf16>
    %cst = arith.constant dense<0.000000e+00> : vector<16x128xf32>
    %2 = tpu.matmul %0, %1, %cst {dimension_numbers = #tpu.dot_dimension_numbers<[1], [0], [0], [1], [0, 0, 1, 1], [], []>} : vector<16x36xbf16>, vector<36x128xbf16>, vector<16x128xf32> -> vector<16x128xf32>
    %c0_3 = arith.constant 0 : index
    %c0_4 = arith.constant 0 : index
    %3 = vector.load %arg3[%c0_3, %c0_4] : memref<1x128xf32, #tpu.memory_space<vmem>>, vector<1x128xf32>
    %4 = vector.broadcast %3 : vector<1x128xf32> to vector<16x128xf32>
    %5 = arith.addf %2, %4 : vector<16x128xf32>
    %cst_5 = arith.constant 0.000000e+00 : f32
    %6 = vector.broadcast %cst_5 : f32 to vector<16x128xf32>
    %7 = arith.maximumf %5, %6 : vector<16x128xf32>
    %8 = arith.truncf %7 : vector<16x128xf32> to vector<16x128xbf16>
    %c0_6 = arith.constant 0 : index
    %c0_7 = arith.constant 0 : index
    %9 = vector.load %arg4[%c0_6, %c0_7] : memref<128x64xbf16, #tpu.memory_space<vmem>>, vector<128x64xbf16>
    %cst_8 = arith.constant dense<0.000000e+00> : vector<16x64xf32>
    %10 = tpu.matmul %8, %9, %cst_8 {dimension_numbers = #tpu.dot_dimension_numbers<[1], [0], [0], [1], [0, 0, 1, 1], [], []>} : vector<16x128xbf16>, vector<128x64xbf16>, vector<16x64xf32> -> vector<16x64xf32>
    %c0_9 = arith.constant 0 : index
    %c0_10 = arith.constant 0 : index
    %11 = vector.load %arg5[%c0_9, %c0_10] : memref<1x64xf32, #tpu.memory_space<vmem>>, vector<1x64xf32>
    %12 = vector.broadcast %11 : vector<1x64xf32> to vector<16x64xf32>
    %13 = arith.addf %10, %12 : vector<16x64xf32>
    %cst_11 = arith.constant 0.000000e+00 : f32
    %14 = vector.broadcast %cst_11 : f32 to vector<16x64xf32>
    %15 = arith.maximumf %13, %14 : vector<16x64xf32>
    %16 = arith.truncf %15 : vector<16x64xf32> to vector<16x64xbf16>
    %c0_12 = arith.constant 0 : index
    %c0_13 = arith.constant 0 : index
    %17 = vector.load %arg6[%c0_12, %c0_13] : memref<64x128xbf16, #tpu.memory_space<vmem>>, vector<64x128xbf16>
    %cst_14 = arith.constant dense<0.000000e+00> : vector<16x128xf32>
    %18 = tpu.matmul %16, %17, %cst_14 {dimension_numbers = #tpu.dot_dimension_numbers<[1], [0], [0], [1], [0, 0, 1, 1], [], []>} : vector<16x64xbf16>, vector<64x128xbf16>, vector<16x128xf32> -> vector<16x128xf32>
    %c0_15 = arith.constant 0 : index
    %c0_16 = arith.constant 0 : index
    %19 = vector.load %arg7[%c0_15, %c0_16] : memref<1x128xf32, #tpu.memory_space<vmem>>, vector<1x128xf32>
    %20 = vector.broadcast %19 : vector<1x128xf32> to vector<16x128xf32>
    %21 = arith.addf %18, %20 : vector<16x128xf32>
    %c0_17 = arith.constant 0 : index
    %c0_18 = arith.constant 0 : index
    %22 = vector.load %arg8[%c0_17, %c0_18] : memref<16x128xf32, #tpu.memory_space<vmem>>, vector<16x128xf32>
    tpu.vector_store %arg8[%c0_17, %c0_18], %21 {strides = array<i32>} : memref<16x128xf32, #tpu.memory_space<vmem>>, vector<16x128xf32>,
    return
  }
  func.func @transform_0(%arg0: i32) -> (i32, i32) {
    %c0_i32 = arith.constant 0 : i32
    %c0_i32_0 = arith.constant 0 : i32
    return %arg0, %c0_i32 : i32, i32
  }
  func.func @transform_1(%arg0: i32) -> (i32, i32) {
    %c0_i32 = arith.constant 0 : i32
    %c0_i32_0 = arith.constant 0 : i32
    %c0_i32_1 = arith.constant 0 : i32
    return %c0_i32, %c0_i32_0 : i32, i32
  }
  func.func @transform_2(%arg0: i32) -> (i32, i32) {
    %c0_i32 = arith.constant 0 : i32
    %c0_i32_0 = arith.constant 0 : i32
    %c0_i32_1 = arith.constant 0 : i32
    return %c0_i32, %c0_i32_0 : i32, i32
  }
  func.func @transform_3(%arg0: i32) -> (i32, i32) {
    %c0_i32 = arith.constant 0 : i32
    %c0_i32_0 = arith.constant 0 : i32
    %c0_i32_1 = arith.constant 0 : i32
    return %c0_i32, %c0_i32_0 : i32, i32
  }
  func.func @transform_4(%arg0: i32) -> (i32, i32) {
    %c0_i32 = arith.constant 0 : i32
    %c0_i32_0 = arith.constant 0 : i32
    %c0_i32_1 = arith.constant 0 : i32
    return %c0_i32, %c0_i32_0 : i32, i32
  }
  func.func @transform_5(%arg0: i32) -> (i32, i32) {
    %c0_i32 = arith.constant 0 : i32
    %c0_i32_0 = arith.constant 0 : i32
    %c0_i32_1 = arith.constant 0 : i32
    return %c0_i32, %c0_i32_0 : i32, i32
  }
  func.func @transform_6(%arg0: i32) -> (i32, i32) {
    %c0_i32 = arith.constant 0 : i32
    %c0_i32_0 = arith.constant 0 : i32
    %c0_i32_1 = arith.constant 0 : i32
    return %c0_i32, %c0_i32_0 : i32, i32
  }
  func.func @transform_7(%arg0: i32) -> (i32, i32) {
    %c0_i32 = arith.constant 0 : i32
    %c0_i32_0 = arith.constant 0 : i32
    return %arg0, %c0_i32 : i32, i32
  }
}

</mosaic_0001>

<bundles_post_ra>
// kernel: tpu_custom_call.1
= control target key start
LH: loop header
LB: loop body
LE: loop exit
PB: predicated region body
PF: predicated region fallthrough
CT: control target
= control target key end

     0   :  { %v457_v1 = vmov 0.0   ;;  %vm458_vm0 = vmmov 0   ;;  %vm66_vm1 = vcmask 1041408   ;;  %vm62_vm2 = vcmask 293888   ;;  %s574_s0 = inlined_call_operand.vmem [shape: bf16[16,36], index: 0, kind: input, shape index: {}]   ;;  %s575_s1 = inlined_call_operand.vmem [shape: bf16[36,128], index: 1, kind: input, shape index: {}]   ;;  %s576_s2 = inlined_call_operand.vmem [shape: f32[1,128], index: 2, kind: input, shape index: {}]   ;;  %s577_s3 = inlined_call_operand.vmem [shape: bf16[128,64], index: 3, kind: input, shape index: {}]   ;;  %s578_s4 = inlined_call_operand.vmem [shape: f32[1,64], index: 4, kind: input, shape index: {}]   ;;  %s579_s5 = inlined_call_operand.vmem [shape: bf16[64,128], index: 5, kind: input, shape index: {}]   ;;  %s580_s6 = inlined_call_operand.vmem [shape: f32[1,128], index: 6, kind: input, shape index: {}]   ;;  %s581_s7 = inlined_call_operand.hbm [shape: f32[16,128], index: 7, kind: output, shape index: {}]  }
   0x1   :  { %v417_v0 = vld [vmem:[%s575_s1] sm:$0xff]   ;;  %370 = vmatprep.subr.bf16.mxu0 %v457_v1  ;;  %v418_v2 = vld [vmem:[%s575_s1 + $0x8] sm:$0xff]   ;;  %380 = vmatprep.subr.bf16.mxu1 %v457_v1  ;;  %v419_v3 = vld [vmem:[%s575_s1 + $0x10] ss:$0 sps:$4 sm:$0x33]  }
   0x2   :  { %371 = vmatpush3.bf16.msra.mxu0 %v417_v0  ;;  %376 = vmatprep.mubr.msk.bf16.mxu0 %vm458_vm0, %v457_v1  ;;  %v421_v4 = vld [vmem:[%s577_s3] sm:$0xff]   ;;  %v422_v5 = vld [vmem:[%s577_s3 + $0x8] sm:$0xff]   ;;  %v68_v6 = vsel %vm66_vm1, %v419_v3, 0  ;;  %v423_v8 = vld [vmem:[%s577_s3 + $0x10] sm:$0xff]  }
   0x3   :  { %372 = vmatprep.subr.bf16.mxu0 %v457_v1  ;;  %396 = vmatprep.mubr.msk.bf16.mxu1 %vm458_vm0, %v457_v1  ;;  %v420_v7 = vld [vmem:[%s574_s0] sm:$0xff]   ;;  %v424_v9 = vld [vmem:[%s577_s3 + $0x18] sm:$0xff]  }
   0x4   :  { %381 = vmatpush3.bf16.msra.mxu1 %v421_v4 }
   0x5   :  { %382 = vmatprep.subr.bf16.mxu1 %v457_v1 }
   0x6   :  { %373 = vmatpush3.bf16.msra.mxu0 %v418_v2 }
   0x7   :  { %374 = vmatprep.subr.bf16.mxu0 %v457_v1 }
   0x8   :  { %383 = vmatpush3.bf16.msra.mxu1 %v422_v5 }
   0x9   :  { %384 = vmatprep.subr.bf16.mxu1 %v457_v1 }
   0xa   :  { %375 = vmatpush3.bf16.msra.mxu0 %v68_v6 }
   0xb   :  { %400 = vmatprep.subr.bf16.mxu0 %v457_v1 }
   0xc   :  { %385 = vmatpush3.bf16.msra.mxu1 %v423_v8 }
   0xd   :  { %377 = vmatmul.mubr.msk.bf16.vlgmr.msra.gmra.mrb[0].mxu0 %vm62_vm2, %v420_v7 }
   0xe   :  { %408 = vmatprep.mubr.msk.bf16.mxu0 %vm458_vm0, %v457_v1 }
   0xf   :  { %12 = vsyncpa [#allocation3], 0  ;;  %386 = vmatprep.subr.bf16.mxu1 %v457_v1  ;;  %v425_v10 = vld [vmem:[%s577_s3 + $0x20] sm:$0xff]   ;;  %v426_v11 = vld [vmem:[%s577_s3 + $0x28] sm:$0xff]   ;;  %vm268_vm3 = vcmask 523264  }
  0x10   :  { %387 = vmatpush3.bf16.msra.mxu1 %v424_v9  ;;  %v427_v12 = vld [vmem:[%s577_s3 + $0x30] sm:$0xff]   ;;  %v428_v13 = vld [vmem:[%s577_s3 + $0x38] sm:$0xff]   ;;  %v429_v14 = vld [vmem:[%s579_s5] sm:$0xff]  }
  0x11   :  { %388 = vmatprep.subr.bf16.mxu1 %v457_v1  ;;  %401 = vmatpush3.bf16.msra.mxu0 %v429_v14  ;;  %v430_v15 = vld [vmem:[%s579_s5 + $0x8] sm:$0xff]   ;;  %v331_v16 = vld [vmem:[%s576_s2] ss:$0 sm:$0xff]  ;;  %v431_v26 = vld [vmem:[%s579_s5 + $0x10] sm:$0xff]  }
  0x12   :  { %402 = vmatprep.subr.bf16.mxu0 %v457_v1  ;;  %v432_v27 = vld [vmem:[%s579_s5 + $0x18] sm:$0xff]   ;;  %v337_v28 = vld [vmem:[%s578_s4] ss:$0 sm:$0xff]  ;;  %s459_s5 = smov [#allocation2]  }
  0x13   :  { %v346_v38 = vld [vmem:[%s580_s6] ss:$0 sm:$0xff]  ;;  %s320_s11 = sshll.u32 %s459_s5, 4  ;;  %s321_s11 = int_to_ptr.vmem [resolvable:$true] %s320_s11 }
  0x14   :  { %389 = vmatpush3.bf16.msra.mxu1 %v425_v10  ;;  %s433_s4 = scalar_lea.vmem %s321_s11, 256  ;;  %p438_p1 = scmp.lt.s32.totalorder %s321_s11, %s321_s11 }
  0x15   :  { %390 = vmatprep.subr.bf16.mxu1 %v457_v1  ;;  %403 = vmatpush3.bf16.msra.mxu0 %v430_v15  ;;  %p434_p0 = scmp.ne.s32.totalorder %s321_s11, %s433_s4  ;;  %p439_p2 = scmp.lt.s32.totalorder %s433_s4, %s433_s4 }
  0x16   :  { %404 = vmatprep.subr.bf16.mxu0 %v457_v1 }
  0x17   :  { %p440_p3 = por %p439_p2, %p438_p1 }
  0x18   :  { %391 = vmatpush3.bf16.msra.mxu1 %v426_v11 }
  0x19   :  { %392 = vmatprep.subr.bf16.mxu1 %v457_v1  ;;  %405 = vmatpush3.bf16.msra.mxu0 %v431_v26  ;;  %p441_p4 = pnand %p440_p3, %p434_p0 }
  0x1a   :  { %406 = vmatprep.subr.bf16.mxu0 %v457_v1 }
  0x1c   :  { %393 = vmatpush3.bf16.msra.mxu1 %v427_v12 }
  0x1d   :  { %394 = vmatprep.subr.bf16.mxu1 %v457_v1  ;;  %407 = vmatpush3.bf16.msra.mxu0 %v432_v27 }
  0x20   :  { %395 = vmatpush3.bf16.msra.mxu1 %v428_v13 }
  0xe0   :  { %v104_v17 = vpop.f32.mrb[0].mxu0 }
  0xe1   :  { %v105_v18 = vadd.f32 %v331_v16, %v104_v17  ;;  %v378_v19 = vpop.f32.mrb[1].mxu0 }
  0xe2   :  { %v107_v20 = vpop.f32.mrb[2].mxu0 }
  0xe3   :  { %v108_v21 = vadd.f32 %v331_v16, %v107_v20  ;;  %v379_v22 = vpop.f32.mrb[3].mxu0  ;;  %v111_v23 = vmax.f32 %v105_v18, 0.0 }
  0xe5   :  { %v112_v24 = vmax.f32 %v108_v21, 0.0 }
  0xe7   :  { %v113_v25 = vpack.c.bf16 %v112_v24, %v111_v23 }
  0xe9   :  { %397 = vmatmul.mubr.bf16.vlgmr.msra.gmra.mrb[0].mxu1 %v113_v25 }
 0x1bc   :  { %v219_v29 = vpop.f32.mrb[0].mxu1 }
 0x1bd   :  { %v220_v30 = vadd.f32 %v337_v28, %v219_v29  ;;  %v398_v31 = vpop.f32.mrb[1].mxu1 }
 0x1be   :  { %v222_v32 = vpop.f32.mrb[2].mxu1 }
 0x1bf   :  { %v223_v33 = vadd.f32 %v337_v28, %v222_v32  ;;  %v399_v34 = vpop.f32.mrb[3].mxu1  ;;  %v226_v35 = vmax.f32 %v220_v30, 0.0 }
 0x1c1   :  { %v227_v36 = vmax.f32 %v223_v33, 0.0 }
 0x1c3   :  { %v228_v37 = vpack.c.bf16 %v227_v36, %v226_v35 }
 0x1c5   :  { %409 = vmatmul.mubr.msk.bf16.vlgmr.msra.gmra.mrb[4].mxu0 %vm268_vm3, %v228_v37 }
 0x298   :  { %v306_v39 = vpop.f32.mrb[4].mxu0 }
 0x299   :  { %v307_v40 = vadd.f32 %v346_v38, %v306_v39  ;;  %v410_v41 = vpop.f32.mrb[5].mxu0 }
 0x29a   :  { %v309_v42 = vpop.f32.mrb[6].mxu0 }
 0x29b   :  { %313 = vst [vmem:[#allocation2] sm:$0xff] %v307_v40  ;;  %v310_v43 = vadd.f32 %v346_v38, %v309_v42  ;;  %v411_v44 = vpop.f32.mrb[7].mxu0 }
 0x29d   :  { %314 = vst [vmem:[#allocation2 + $0x8] sm:$0xff] %v310_v43 }
 0x29e   :  { %444 = shalt.err (!%p441_p4)
}
 0x29f   :  { %s445_s13 = scalar_lea.hbm %s581_s7, 256 }
 0x2a0   :  { %p446_p5 = scmp.ne.s32.totalorder %s581_s7, %s445_s13  ;;  %p449_p6 = scmp.lt.u32.totalorder %s445_s13, %s581_s7 }
 0x2a2   :  { %p451_p7 = pnand %p449_p6, %p446_p5 }
 0x2a4   :  { %454 = shalt.err (!%p451_p7)
}
 0x2a5   :  { %s460_s17 = smov 128   ;;  %s461_s18 = smov 8  }
 0x2a6   :  { %326 = dma.vmem_to_hbm [thread:$0]  %s321_s11, 256, %s581_s7, [#allocation3], %s460_s17, %s460_s17, %s461_s18  }
 0x2a7   :  { %455 = dma.done.wait [#allocation3], 256  }
 0x2a8   :  { %456 = vsyncadd [#allocation3], 4294967040 }
 0x2a9   :  { %330 = vsyncpa [#allocation3], 1 }

</bundles_post_ra>
